<compile_context>
chip_gen: v7x
topology: tpu7x:2x2x1
jax: 0.10.0
libtpu: 0.0.40
codegen_flags: <defaults>
</compile_context>

<pallas_src>
import functools

import jax
import jax.numpy as jnp
from jax.experimental import pallas as pl
from jax.experimental.pallas import tpu as pltpu

_LANE = 128                       # vreg lane width
_SUBLANE = 8                      # f32 sublane count
_MIN_PER_CORE_ROWS = 256          # v7x MXU wants >=256-row LHS tiles per TC
_SINGLE_BUFFER_WEIGHT_BYTES = 4 << 20   # only single-buffer "large" weights


def _round_up(n, m):
    return ((n + m - 1) // m) * m


def _ceil_div(a, b):
    return -(-a // b)


# ------------------------------ kernel body --------------------------------

def _mlp_kernel(x_ref,
                w1_ref, b1_ref,
                w2_ref, b2_ref,
                w3_ref, b3_ref,
                w4_ref, b4_ref,
                w5_ref, b5_ref,
                out_ref):
    """Entire 5-layer MLP hot path (matmuls + bias + ReLU) for one batch tile."""

    def linear(h, w_ref, b_ref):
        # MXU matmul with f32 accumulation; bias-add / ReLU stay in f32
        # (v5e VPU has no bf16 elementwise support).  The LHS cast to the
        # weight dtype (bf16 by default) keeps MXU operands narrow.
        return jnp.dot(h.astype(w_ref.dtype), w_ref[...],
                       preferred_element_type=jnp.float32) + b_ref[...]

    h = x_ref[...]
    h = jnp.maximum(linear(h, w1_ref, b1_ref), 0.0)
    h = jnp.maximum(linear(h, w2_ref, b2_ref), 0.0)
    h = jnp.maximum(linear(h, w3_ref, b3_ref), 0.0)
    h = jnp.maximum(linear(h, w4_ref, b4_ref), 0.0)
    out = linear(h, w5_ref, b5_ref)     # constrain_out=False -> identity out_fn
    out_ref[...] = out.astype(out_ref.dtype)


# ---------------------------- parameter prep -------------------------------

def prepare_params(params, *, compute_dtype=jnp.bfloat16):
    """One-time weight prep (call OUTSIDE the hot loop).

    Transposes PyTorch-layout (out,in) weights to (in,out), zero-pads
    hidden/output feature dims to multiples of 128 lanes and the input dim to
    the sublane-packing multiple of the compute dtype, reshapes biases to
    (1,F), and casts matmul operands to compute_dtype (biases stay f32).
    Zero padding is exact: padded lanes get bias 0, ReLU(0)=0, padded weight
    rows/cols are 0.  Returns (prepped_params_dict, out_dim).
    """
    hid = int(params["w1"].shape[0])
    in_dim = int(params["w1"].shape[1])
    out_dim = int(params["w5"].shape[0])
    # K-dim alignment: 8 sublanes for f32, 16 for bf16 (sublane packing).
    k_align = max(_SUBLANE, 32 // jnp.dtype(compute_dtype).itemsize)
    in_p = _round_up(in_dim, k_align)
    hid_p = _round_up(hid, _LANE)
    out_p = _round_up(out_dim, _LANE)

    def pad_w(w_t, rows, cols):  # w_t already in (in, out) layout
        z = jnp.zeros((rows, cols), jnp.float32)
        return z.at[:w_t.shape[0], :w_t.shape[1]].set(w_t.astype(jnp.float32))

    def pad_b(b, cols):
        z = jnp.zeros((1, cols), jnp.float32)
        return z.at[0, :b.shape[0]].set(b.astype(jnp.float32))

    prepped = {
        "w1": pad_w(params["w1"].T, in_p, hid_p).astype(compute_dtype),
        "b1": pad_b(params["b1"], hid_p),
        "w2": pad_w(params["w2"].T, hid_p, hid_p).astype(compute_dtype),
        "b2": pad_b(params["b2"], hid_p),
        "w3": pad_w(params["w3"].T, hid_p, hid_p).astype(compute_dtype),
        "b3": pad_b(params["b3"], hid_p),
        "w4": pad_w(params["w4"].T, hid_p, hid_p).astype(compute_dtype),
        "b4": pad_b(params["b4"], hid_p),
        "w5": pad_w(params["w5"].T, hid_p, out_p).astype(compute_dtype),
        "b5": pad_b(params["b5"], out_p),
    }
    return prepped, out_dim


def prepare_params_ensemble(params_list, *, compute_dtype=jnp.bfloat16):
    """Stack per-model prepped params along a leading model axis."""
    prepped_list = []
    out_dim = None
    for p in params_list:
        pp, out_dim = prepare_params(p, compute_dtype=compute_dtype)
        prepped_list.append(pp)
    stacked = {k: jnp.stack([pp[k] for pp in prepped_list])
               for k in prepped_list[0]}
    return stacked, out_dim


# ------------------------------ tiling logic --------------------------------

def _default_num_cores():
    """Best-effort TensorCore count (v5e/v6e: 1, v7x: 2). Defaults to 1."""
    try:
        info = pltpu.get_tpu_info()
        for attr in ("num_cores", "core_count", "num_tensorcores"):
            v = getattr(info, attr, None)
            if v and int(v) > 0:
                return int(v)
    except Exception:
        pass
    return 1


def _choose_batch_tile(B, block_b, num_cores):
    """Batch tile size (static Python int).

    * Single-TC chips (v5e/v6e) or small batches: one big tile (no forced
      split -> full MXU row occupancy, no pipeline overhead).
    * Multi-TC (v7x): split only when each per-core tile stays >= 256 rows,
      aiming for an even grid length so neither core idles.
    """
    block_b = max(_SUBLANE, _round_up(block_b, _SUBLANE))
    if B <= _SUBLANE:
        return max(B, 1)
    if num_cores >= 2 and B >= 2 * _MIN_PER_CORE_ROWS:
        n_tiles = 2 * _ceil_div(B, 2 * block_b)          # even tile count
        tile = _round_up(_ceil_div(B, n_tiles), _SUBLANE)
        if tile >= _MIN_PER_CORE_ROWS:
            return min(tile, block_b)
    return min(block_b, _round_up(B, _SUBLANE))


_PARAM_ORDER = ("w1", "b1", "w2", "b2", "w3", "b3", "w4", "b4", "w5", "b5")


def _maybe_single_buffer_spec(block_shape, index_map, single_buffer):
    """Constant-block spec; single-buffered when large & supported."""
    if single_buffer:
        try:
            return pl.BlockSpec(block_shape, index_map,
                                pipeline_mode=pl.Buffered(1))
        except Exception:
            pass  # older runtimes without pipeline_mode support
    return pl.BlockSpec(block_shape, index_map)


# ------------------------------ single model --------------------------------

@functools.partial(jax.jit, static_argnames=("block_b", "num_cores"))
def mlp_forward(x, prepped, *, block_b=512, num_cores=1):
    """Fused 5-layer MLP forward.

    Returns the lane-dense padded output (B, out_p); slice [:, :out_dim]
    lazily in the consumer (deferring the slice keeps the kernel's store
    unmasked and avoids an extra XLA op on the hot path).
    """
    B = x.shape[0]
    in_p = prepped["w1"].shape[0]
    hid_p = prepped["w1"].shape[1]
    out_p = prepped["w5"].shape[1]
    if x.shape[1] != in_p:                       # zero-pad K dim (exact)
        x = jnp.pad(x, ((0, 0), (0, in_p - x.shape[1])))

    tile = _choose_batch_tile(B, block_b, num_cores)
    grid = (_ceil_div(B, tile),)

    ws = [prepped[k] for k in _PARAM_ORDER]
    weight_bytes = sum(int(v.size) * v.dtype.itemsize for v in ws)
    single_buffer = weight_bytes >= _SINGLE_BUFFER_WEIGHT_BYTES

    def const_spec(shape):
        zeros = (0,) * len(shape)
        return _maybe_single_buffer_spec(shape, lambda i: zeros, single_buffer)

    # Advisory cost hint for the XLA scheduler around this custom call.
    flops = 2.0 * B * (in_p * hid_p + 3 * hid_p * hid_p + hid_p * out_p)
    bytes_accessed = (B * in_p * x.dtype.itemsize
                      + B * out_p * x.dtype.itemsize + weight_bytes)
    cost = pl.CostEstimate(flops=int(flops), transcendentals=0,
                           bytes_accessed=int(bytes_accessed))

    # VMEM budget: weights (single or double buffered) + double-buffered x/out
    # tiles + f32 activation temporaries, with headroom; clamped to a range
    # that is safe on v5e (16 MiB default scoped) through v7x (64 MiB phys).
    io_bytes = 2 * tile * (in_p + out_p) * 4
    act_bytes = 8 * tile * max(in_p, hid_p, out_p) * 4
    est = ((1 if single_buffer else 2) * weight_bytes
           + io_bytes + act_bytes + (4 << 20))
    vmem_limit = int(min(48 << 20, max(32 << 20, est)))

    return pl.pallas_call(
        _mlp_kernel,
        out_shape=jax.ShapeDtypeStruct((B, out_p), x.dtype),
        grid_spec=pltpu.PrefetchScalarGridSpec(
            num_scalar_prefetch=0,
            grid=grid,
            in_specs=[pl.BlockSpec((tile, in_p), lambda i: (i, 0))]
                     + [const_spec(v.shape) for v in ws],
            out_specs=pl.BlockSpec((tile, out_p), lambda i: (i, 0)),
        ),
        compiler_params=pltpu.CompilerParams(
            dimension_semantics=("parallel",),
            vmem_limit_bytes=vmem_limit,
        ),
        cost_estimate=cost,
    )(x, *ws)


# ----------------------- ensemble of independent MLPs -----------------------

@functools.partial(jax.jit, static_argnames=("block_b", "num_cores"))
def mlp_forward_ensemble(x, prepped, *, block_b=512, num_cores=1):
    """Run M independent MLPNetworks (agents/critics/ensemble) in ONE call.

    x: (M, B, in_dim); prepped: stacked params from prepare_params_ensemble.
    Returns padded (M, B, out_p); slice [..., :out_dim] in the consumer.
    """
    M, B, _ = x.shape
    in_p = prepped["w1"].shape[1]
    hid_p = prepped["w1"].shape[2]
    out_p = prepped["w5"].shape[2]
    if x.shape[2] != in_p:
        x = jnp.pad(x, ((0, 0), (0, 0), (0, in_p - x.shape[2])))

    tile = _choose_batch_tile(B, block_b, num_cores)
    grid = (M, _ceil_div(B, tile))

    ws = [prepped[k] for k in _PARAM_ORDER]
    weight_bytes = sum(int(v.size) * v.dtype.itemsize for v in ws)

    def model_spec(shape3):
        # Per-model weight/bias: changes only with the model grid axis, so it
        # is DMA'd once per model and reused across all batch tiles.
        blk = (None,) + tuple(int(s) for s in shape3[1:])
        tail = (0,) * (len(blk) - 1)
        return pl.BlockSpec(blk, lambda m, i: (m,) + tail)

    flops = 2.0 * M * B * (in_p * hid_p + 3 * hid_p * hid_p + hid_p * out_p)
    bytes_accessed = (M * B * (in_p + out_p) * x.dtype.itemsize + weight_bytes)
    cost = pl.CostEstimate(flops=int(flops), transcendentals=0,
                           bytes_accessed=int(bytes_accessed))

    per_model_weight_bytes = weight_bytes // max(M, 1)
    io_bytes = 2 * tile * (in_p + out_p) * 4
    act_bytes = 8 * tile * max(in_p, hid_p, out_p) * 4
    est = 2 * per_model_weight_bytes + io_bytes + act_bytes + (4 << 20)
    vmem_limit = int(min(48 << 20, max(32 << 20, est)))

    return pl.pallas_call(
        _mlp_kernel,
        out_shape=jax.ShapeDtypeStruct((M, B, out_p), x.dtype),
        grid_spec=pltpu.PrefetchScalarGridSpec(
            num_scalar_prefetch=0,
            grid=grid,
            in_specs=[pl.BlockSpec((None, tile, in_p), lambda m, i: (m, i, 0))]
                     + [model_spec(v.shape) for v in ws],
            out_specs=pl.BlockSpec((None, tile, out_p), lambda m, i: (m, i, 0)),
        ),
        compiler_params=pltpu.CompilerParams(
            dimension_semantics=("parallel", "parallel"),
            vmem_limit_bytes=vmem_limit,
        ),
        cost_estimate=cost,
    )(x, *ws)


# ------------------------- param init / reference --------------------------

def fanin_init(key, shape):
    """Matches fanin_init: uniform(-1/sqrt(fan_in), 1/sqrt(fan_in))."""
    fan_in = shape[1]
    lim = 1.0 / jnp.sqrt(jnp.float32(fan_in))
    return jax.random.uniform(key, shape, jnp.float32, -lim, lim)


def default_linear_init(key, shape):
    """PyTorch nn.Linear default: uniform(-1/sqrt(fan_in), 1/sqrt(fan_in))."""
    fan_in = shape[1]
    lim = 1.0 / jnp.sqrt(jnp.float32(fan_in))
    return jax.random.uniform(key, shape, jnp.float32, -lim, lim)


def init_params(key, input_dim, out_dim, hidden_dim):
    keys = jax.random.split(key, 10)

    def blim(fan_in):
        return 1.0 / jnp.sqrt(jnp.float32(fan_in))

    # Weights kept in PyTorch layout (out_features, in_features).
    return {
        "w1": fanin_init(keys[0], (hidden_dim, input_dim)),
        "b1": jax.random.uniform(keys[1], (hidden_dim,), jnp.float32,
                                 -blim(input_dim), blim(input_dim)),
        "w2": fanin_init(keys[2], (hidden_dim, hidden_dim)),
        "b2": jax.random.uniform(keys[3], (hidden_dim,), jnp.float32,
                                 -blim(hidden_dim), blim(hidden_dim)),
        "w3": fanin_init(keys[4], (hidden_dim, hidden_dim)),
        "b3": jax.random.uniform(keys[5], (hidden_dim,), jnp.float32,
                                 -blim(hidden_dim), blim(hidden_dim)),
        "w4": fanin_init(keys[6], (hidden_dim, hidden_dim)),
        "b4": jax.random.uniform(keys[7], (hidden_dim,), jnp.float32,
                                 -blim(hidden_dim), blim(hidden_dim)),
        "w5": default_linear_init(keys[8], (out_dim, hidden_dim)),
        "b5": jax.random.uniform(keys[9], (out_dim,), jnp.float32,
                                 -blim(hidden_dim), blim(hidden_dim)),
    }


def mlp_reference(x, params):
    """Pure-JAX reference matching the PyTorch forward."""
    h = jax.nn.relu(x @ params["w1"].T + params["b1"])
    h = jax.nn.relu(h @ params["w2"].T + params["b2"])
    h = jax.nn.relu(h @ params["w3"].T + params["b3"])
    h = jax.nn.relu(h @ params["w4"].T + params["b4"])
    return h @ params["w5"].T + params["b5"]


if __name__ == "__main__":
    key = jax.random.PRNGKey(0)
    k_params, k_x, k_ens = jax.random.split(key, 3)

    batch, input_dim, hidden_dim, out_dim = 32, 16, 32, 4
    params = init_params(k_params, input_dim, out_dim, hidden_dim)
    x = jax.random.normal(k_x, (batch, input_dim), jnp.float32)
    ref = mlp_reference(x, params)

    num_cores = _default_num_cores()   # 1 on v5e/v6e, 2 on v7x

    # --- 1) Exactness check: f32 MXU operands --------------------------------
    prepped_f32, od = prepare_params(params, compute_dtype=jnp.float32)
    out_f32 = jax.block_until_ready(mlp_forward(x, prepped_f32,
                                                num_cores=num_cores))
    out_f32 = out_f32[:, :od]          # lazy consumer-side trim of lane padding
    assert out_f32.shape == (batch, out_dim)
    assert jnp.allclose(out_f32, ref, atol=1e-5, rtol=1e-5), \
        "f32 path mismatch vs reference"

    # --- 2) Default fast path: bf16 MXU operands, f32 accumulation -----------
    # bf16 operand rounding compounds over 5 layers -> loose tolerance here.
    prepped_bf16, od = prepare_params(params)          # default bf16
    out_bf16 = jax.block_until_ready(mlp_forward(x, prepped_bf16,
                                                 num_cores=num_cores))[:, :od]
    assert jnp.allclose(out_bf16, ref, atol=5e-2, rtol=5e-2), \
        "bf16 path mismatch vs reference"

    # --- 3) Ensemble: several MADDPG networks in ONE pallas_call -------------
    n_models = 3
    ekeys = jax.random.split(k_ens, 2 * n_models)
    params_list = [init_params(ekeys[2 * m], input_dim, out_dim, hidden_dim)
                   for m in range(n_models)]
    xs = jnp.stack([jax.random.normal(ekeys[2 * m + 1],
                                      (batch, input_dim), jnp.float32)
                    for m in range(n_models)])
    prepped_ens, od = prepare_params_ensemble(params_list)
    out_ens = jax.block_until_ready(
        mlp_forward_ensemble(xs, prepped_ens, num_cores=num_cores))
    assert out_ens.shape[:2] == (n_models, batch)
    for m in range(n_models):
        ref_m = mlp_reference(xs[m], params_list[m])
        assert jnp.allclose(out_ens[m, :, :od], ref_m, atol=5e-2, rtol=5e-2), \
            f"ensemble model {m} mismatch vs reference"

    print("KERNEL_OK")
</pallas_src>

<mosaic_0001>
module attributes {stable_mosaic.version = 11 : i64} {
  func.func @_mlp_kernel(%arg0: i32, %arg1: memref<32x16xf32, #tpu.memory_space<vmem>>, %arg2: memref<16x128xf32, #tpu.memory_space<vmem>>, %arg3: memref<1x128xf32, #tpu.memory_space<vmem>>, %arg4: memref<128x128xf32, #tpu.memory_space<vmem>>, %arg5: memref<1x128xf32, #tpu.memory_space<vmem>>, %arg6: memref<128x128xf32, #tpu.memory_space<vmem>>, %arg7: memref<1x128xf32, #tpu.memory_space<vmem>>, %arg8: memref<128x128xf32, #tpu.memory_space<vmem>>, %arg9: memref<1x128xf32, #tpu.memory_space<vmem>>, %arg10: memref<128x128xf32, #tpu.memory_space<vmem>>, %arg11: memref<1x128xf32, #tpu.memory_space<vmem>>, %arg12: memref<32x128xf32, #tpu.memory_space<vmem>>) attributes {dimension_semantics = [#tpu.dimension_semantics<parallel>], iteration_bounds = array<i64: 1>, scalar_prefetch = 0 : i64, scratch_operands = 0 : i64, tpu.core_type = #tpu.core_type<tc>, window_params = [{transform_indices = @transform_0, window_bounds = array<i64: 32, 16>}, {pipeline_mode = #tpu.pipeline_mode<synchronous>, transform_indices = @transform_1, window_bounds = array<i64: 16, 128>}, {pipeline_mode = #tpu.pipeline_mode<synchronous>, transform_indices = @transform_2, window_bounds = array<i64: 1, 128>}, {pipeline_mode = #tpu.pipeline_mode<synchronous>, transform_indices = @transform_3, window_bounds = array<i64: 128, 128>}, {pipeline_mode = #tpu.pipeline_mode<synchronous>, transform_indices = @transform_4, window_bounds = array<i64: 1, 128>}, {pipeline_mode = #tpu.pipeline_mode<synchronous>, transform_indices = @transform_5, window_bounds = array<i64: 128, 128>}, {pipeline_mode = #tpu.pipeline_mode<synchronous>, transform_indices = @transform_6, window_bounds = array<i64: 1, 128>}, {pipeline_mode = #tpu.pipeline_mode<synchronous>, transform_indices = @transform_7, window_bounds = array<i64: 128, 128>}, {pipeline_mode = #tpu.pipeline_mode<synchronous>, transform_indices = @transform_8, window_bounds = array<i64: 1, 128>}, {pipeline_mode = #tpu.pipeline_mode<synchronous>, transform_indices = @transform_9, window_bounds = array<i64: 128, 128>}, {pipeline_mode = #tpu.pipeline_mode<synchronous>, transform_indices = @transform_10, window_bounds = array<i64: 1, 128>}, {transform_indices = @transform_11, window_bounds = array<i64: 32, 128>}]} {
    %c0 = arith.constant 0 : index
    %c0_0 = arith.constant 0 : index
    %0 = vector.load %arg1[%c0, %c0_0] : memref<32x16xf32, #tpu.memory_space<vmem>>, vector<32x16xf32>
    %c0_1 = arith.constant 0 : index
    %c0_2 = arith.constant 0 : index
    %1 = vector.load %arg2[%c0_1, %c0_2] : memref<16x128xf32, #tpu.memory_space<vmem>>, vector<16x128xf32>
    %cst = arith.constant dense<0.000000e+00> : vector<32x128xf32>
    %2 = tpu.matmul %0, %1, %cst {dimension_numbers = #tpu.dot_dimension_numbers<[1], [0], [0], [1], [0, 0, 1, 1], [], []>} : vector<32x16xf32>, vector<16x128xf32>, vector<32x128xf32> -> vector<32x128xf32>
    %c0_3 = arith.constant 0 : index
    %c0_4 = arith.constant 0 : index
    %3 = vector.load %arg3[%c0_3, %c0_4] : memref<1x128xf32, #tpu.memory_space<vmem>>, vector<1x128xf32>
    %4 = vector.broadcast %3 : vector<1x128xf32> to vector<32x128xf32>
    %5 = arith.addf %2, %4 : vector<32x128xf32>
    %cst_5 = arith.constant 0.000000e+00 : f32
    %6 = vector.broadcast %cst_5 : f32 to vector<32x128xf32>
    %7 = arith.maximumf %5, %6 : vector<32x128xf32>
    %c0_6 = arith.constant 0 : index
    %c0_7 = arith.constant 0 : index
    %8 = vector.load %arg4[%c0_6, %c0_7] : memref<128x128xf32, #tpu.memory_space<vmem>>, vector<128x128xf32>
    %cst_8 = arith.constant dense<0.000000e+00> : vector<32x128xf32>
    %9 = tpu.matmul %7, %8, %cst_8 {dimension_numbers = #tpu.dot_dimension_numbers<[1], [0], [0], [1], [0, 0, 1, 1], [], []>} : vector<32x128xf32>, vector<128x128xf32>, vector<32x128xf32> -> vector<32x128xf32>
    %c0_9 = arith.constant 0 : index
    %c0_10 = arith.constant 0 : index
    %10 = vector.load %arg5[%c0_9, %c0_10] : memref<1x128xf32, #tpu.memory_space<vmem>>, vector<1x128xf32>
    %11 = vector.broadcast %10 : vector<1x128xf32> to vector<32x128xf32>
    %12 = arith.addf %9, %11 : vector<32x128xf32>
    %cst_11 = arith.constant 0.000000e+00 : f32
    %13 = vector.broadcast %cst_11 : f32 to vector<32x128xf32>
    %14 = arith.maximumf %12, %13 : vector<32x128xf32>
    %c0_12 = arith.constant 0 : index
    %c0_13 = arith.constant 0 : index
    %15 = vector.load %arg6[%c0_12, %c0_13] : memref<128x128xf32, #tpu.memory_space<vmem>>, vector<128x128xf32>
    %cst_14 = arith.constant dense<0.000000e+00> : vector<32x128xf32>
    %16 = tpu.matmul %14, %15, %cst_14 {dimension_numbers = #tpu.dot_dimension_numbers<[1], [0], [0], [1], [0, 0, 1, 1], [], []>} : vector<32x128xf32>, vector<128x128xf32>, vector<32x128xf32> -> vector<32x128xf32>
    %c0_15 = arith.constant 0 : index
    %c0_16 = arith.constant 0 : index
    %17 = vector.load %arg7[%c0_15, %c0_16] : memref<1x128xf32, #tpu.memory_space<vmem>>, vector<1x128xf32>
    %18 = vector.broadcast %17 : vector<1x128xf32> to vector<32x128xf32>
    %19 = arith.addf %16, %18 : vector<32x128xf32>
    %cst_17 = arith.constant 0.000000e+00 : f32
    %20 = vector.broadcast %cst_17 : f32 to vector<32x128xf32>
    %21 = arith.maximumf %19, %20 : vector<32x128xf32>
    %c0_18 = arith.constant 0 : index
    %c0_19 = arith.constant 0 : index
    %22 = vector.load %arg8[%c0_18, %c0_19] : memref<128x128xf32, #tpu.memory_space<vmem>>, vector<128x128xf32>
    %cst_20 = arith.constant dense<0.000000e+00> : vector<32x128xf32>
    %23 = tpu.matmul %21, %22, %cst_20 {dimension_numbers = #tpu.dot_dimension_numbers<[1], [0], [0], [1], [0, 0, 1, 1], [], []>} : vector<32x128xf32>, vector<128x128xf32>, vector<32x128xf32> -> vector<32x128xf32>
    %c0_21 = arith.constant 0 : index
    %c0_22 = arith.constant 0 : index
    %24 = vector.load %arg9[%c0_21, %c0_22] : memref<1x128xf32, #tpu.memory_space<vmem>>, vector<1x128xf32>
    %25 = vector.broadcast %24 : vector<1x128xf32> to vector<32x128xf32>
    %26 = arith.addf %23, %25 : vector<32x128xf32>
    %cst_23 = arith.constant 0.000000e+00 : f32
    %27 = vector.broadcast %cst_23 : f32 to vector<32x128xf32>
    %28 = arith.maximumf %26, %27 : vector<32x128xf32>
    %c0_24 = arith.constant 0 : index
    %c0_25 = arith.constant 0 : index
    %29 = vector.load %arg10[%c0_24, %c0_25] : memref<128x128xf32, #tpu.memory_space<vmem>>, vector<128x128xf32>
    %cst_26 = arith.constant dense<0.000000e+00> : vector<32x128xf32>
    %30 = tpu.matmul %28, %29, %cst_26 {dimension_numbers = #tpu.dot_dimension_numbers<[1], [0], [0], [1], [0, 0, 1, 1], [], []>} : vector<32x128xf32>, vector<128x128xf32>, vector<32x128xf32> -> vector<32x128xf32>
    %c0_27 = arith.constant 0 : index
    %c0_28 = arith.constant 0 : index
    %31 = vector.load %arg11[%c0_27, %c0_28] : memref<1x128xf32, #tpu.memory_space<vmem>>, vector<1x128xf32>
    %32 = vector.broadcast %31 : vector<1x128xf32> to vector<32x128xf32>
    %33 = arith.addf %30, %32 : vector<32x128xf32>
    %c0_29 = arith.constant 0 : index
    %c0_30 = arith.constant 0 : index
    %34 = vector.load %arg12[%c0_29, %c0_30] : memref<32x128xf32, #tpu.memory_space<vmem>>, vector<32x128xf32>
    tpu.vector_store %arg12[%c0_29, %c0_30], %33 {strides = array<i32>} : memref<32x128xf32, #tpu.memory_space<vmem>>, vector<32x128xf32>,
    return
  }
  func.func @transform_0(%arg0: i32) -> (i32, i32) {
    %c0_i32 = arith.constant 0 : i32
    %c0_i32_0 = arith.constant 0 : i32
    return %arg0, %c0_i32 : i32, i32
  }
  func.func @transform_1(%arg0: i32) -> (i32, i32) {
    %c0_i32 = arith.constant 0 : i32
    %c0_i32_0 = arith.constant 0 : i32
    %c0_i32_1 = arith.constant 0 : i32
    return %c0_i32, %c0_i32_0 : i32, i32
  }
  func.func @transform_2(%arg0: i32) -> (i32, i32) {
    %c0_i32 = arith.constant 0 : i32
    %c0_i32_0 = arith.constant 0 : i32
    %c0_i32_1 = arith.constant 0 : i32
    return %c0_i32, %c0_i32_0 : i32, i32
  }
  func.func @transform_3(%arg0: i32) -> (i32, i32) {
    %c0_i32 = arith.constant 0 : i32
    %c0_i32_0 = arith.constant 0 : i32
    %c0_i32_1 = arith.constant 0 : i32
    return %c0_i32, %c0_i32_0 : i32, i32
  }
  func.func @transform_4(%arg0: i32) -> (i32, i32) {
    %c0_i32 = arith.constant 0 : i32
    %c0_i32_0 = arith.constant 0 : i32
    %c0_i32_1 = arith.constant 0 : i32
    return %c0_i32, %c0_i32_0 : i32, i32
  }
  func.func @transform_5(%arg0: i32) -> (i32, i32) {
    %c0_i32 = arith.constant 0 : i32
    %c0_i32_0 = arith.constant 0 : i32
    %c0_i32_1 = arith.constant 0 : i32
    return %c0_i32, %c0_i32_0 : i32, i32
  }
  func.func @transform_6(%arg0: i32) -> (i32, i32) {
    %c0_i32 = arith.constant 0 : i32
    %c0_i32_0 = arith.constant 0 : i32
    %c0_i32_1 = arith.constant 0 : i32
    return %c0_i32, %c0_i32_0 : i32, i32
  }
  func.func @transform_7(%arg0: i32) -> (i32, i32) {
    %c0_i32 = arith.constant 0 : i32
    %c0_i32_0 = arith.constant 0 : i32
    %c0_i32_1 = arith.constant 0 : i32
    return %c0_i32, %c0_i32_0 : i32, i32
  }
  func.func @transform_8(%arg0: i32) -> (i32, i32) {
    %c0_i32 = arith.constant 0 : i32
    %c0_i32_0 = arith.constant 0 : i32
    %c0_i32_1 = arith.constant 0 : i32
    return %c0_i32, %c0_i32_0 : i32, i32
  }
  func.func @transform_9(%arg0: i32) -> (i32, i32) {
    %c0_i32 = arith.constant 0 : i32
    %c0_i32_0 = arith.constant 0 : i32
    %c0_i32_1 = arith.constant 0 : i32
    return %c0_i32, %c0_i32_0 : i32, i32
  }
  func.func @transform_10(%arg0: i32) -> (i32, i32) {
    %c0_i32 = arith.constant 0 : i32
    %c0_i32_0 = arith.constant 0 : i32
    %c0_i32_1 = arith.constant 0 : i32
    return %c0_i32, %c0_i32_0 : i32, i32
  }
  func.func @transform_11(%arg0: i32) -> (i32, i32) {
    %c0_i32 = arith.constant 0 : i32
    %c0_i32_0 = arith.constant 0 : i32
    return %arg0, %c0_i32 : i32, i32
  }
}

</mosaic_0001>

<bundles_post_ra>
// kernel: mlp_forward.1
= control target key start
LH: loop header
LB: loop body
LE: loop exit
PB: predicated region body
PF: predicated region fallthrough
CT: control target
= control target key end

     0   :  { %16 = vsyncpa [#allocation3], 0  ;;  %s1383_s0 = inlined_call_operand.vmem [shape: f32[32,16], index: 0, kind: input, shape index: {}]   ;;  %s1384_s1 = inlined_call_operand.vmem [shape: f32[16,128], index: 1, kind: input, shape index: {}]   ;;  %s1385_s2 = inlined_call_operand.vmem [shape: f32[1,128], index: 2, kind: input, shape index: {}]   ;;  %s1386_s3 = inlined_call_operand.hbm [shape: f32[128,128], index: 3, kind: input, shape index: {}]   ;;  %s1387_s4 = inlined_call_operand.vmem [shape: f32[1,128], index: 4, kind: input, shape index: {}]   ;;  %s1388_s5 = inlined_call_operand.hbm [shape: f32[128,128], index: 5, kind: input, shape index: {}]   ;;  %s1389_s6 = inlined_call_operand.vmem [shape: f32[1,128], index: 6, kind: input, shape index: {}]   ;;  %s1390_s7 = inlined_call_operand.hbm [shape: f32[128,128], index: 7, kind: input, shape index: {}]   ;;  %s1391_s8 = inlined_call_operand.vmem [shape: f32[1,128], index: 8, kind: input, shape index: {}]   ;;  %s1392_s9 = inlined_call_operand.hbm [shape: f32[128,128], index: 9, kind: input, shape index: {}]   ;;  %s1393_s10 = inlined_call_operand.vmem [shape: f32[1,128], index: 10, kind: input, shape index: {}]   ;;  %s1394_s11 = inlined_call_operand.hbm [shape: f32[32,128], index: 11, kind: output, shape index: {}]  }
   0x1   :  { %17 = vsyncpa [#allocation6], 0 }
   0x2   :  { %18 = vsyncpa [#allocation9], 0 }
   0x3   :  { %19 = vsyncpa [#allocation4], 0  ;;  %s1190_s17 = smov [#allocation5]   ;;  %s1191_s19 = smov [#allocation2]  }
   0x4   :  { %s45_s18 = sshll.u32 %s1190_s17, 4  ;;  %s31_s20 = sshll.u32 %s1191_s19, 4  ;;  %s46_s18 = int_to_ptr.vmem [resolvable:$true] %s45_s18  ;;  %s1257_s20 = int_to_ptr.vmem [resolvable:$true] %s31_s20 }
   0x5   :  { %s1072_s23 = scalar_lea.hbm %s1388_s5, 2048 }
   0x6   :  { %p1073_p0 = scmp.ne.s32.totalorder %s1388_s5, %s1072_s23  ;;  %p1076_p1 = scmp.lt.u32.totalorder %s1072_s23, %s1388_s5 }
   0x8   :  { %p1078_p2 = pnand %p1076_p1, %p1073_p0 }
   0xa   :  { %1081 = shalt.err (!%p1078_p2)
}
   0xb   :  { %s1082_s28 = scalar_lea.vmem %s46_s18, 2048  ;;  %p1087_p4 = scmp.lt.s32.totalorder %s46_s18, %s46_s18 }
   0xc   :  { %p1083_p3 = scmp.ne.s32.totalorder %s46_s18, %s1082_s28  ;;  %p1088_p5 = scmp.lt.s32.totalorder %s1082_s28, %s1082_s28 }
   0xe   :  { %p1089_p6 = por %p1088_p5, %p1087_p4 }
  0x10   :  { %p1090_p7 = pnand %p1089_p6, %p1083_p3 }
  0x12   :  { %1093 = shalt.err (!%p1090_p7)
}
  0x13   :  { %s1192_s29 = smov 128   ;;  %s1193_s30 = smov 8  }
  0x14   :  { %51 = dma.hbm_to_vmem [thread:$0]  %s1388_s5, 2048, %s46_s18, [#allocation6], %s1192_s29, %s1192_s29, %s1193_s30  }
  0x15   :  { %s1094_s16 = scalar_lea.hbm %s1386_s3, 2048 }
  0x16   :  { %p1095_p8 = scmp.ne.s32.totalorder %s1386_s3, %s1094_s16  ;;  %p1098_p9 = scmp.lt.u32.totalorder %s1094_s16, %s1386_s3 }
  0x18   :  { %p1100_p10 = pnand %p1098_p9, %p1095_p8 }
  0x1a   :  { %1103 = shalt.err (!%p1100_p10)
}
  0x1b   :  { %s1104_s23 = scalar_lea.vmem %s1257_s20, 2048  ;;  %p1109_p12 = scmp.lt.s32.totalorder %s1257_s20, %s1257_s20 }
  0x1c   :  { %p1105_p11 = scmp.ne.s32.totalorder %s1257_s20, %s1104_s23  ;;  %p1110_p13 = scmp.lt.s32.totalorder %s1104_s23, %s1104_s23 }
  0x1e   :  { %p1111_p0 = por %p1110_p13, %p1109_p12 }
  0x20   :  { %p1112_p1 = pnand %p1111_p0, %p1105_p11 }
  0x22   :  { %1115 = shalt.err (!%p1112_p1)
}
  0x23   :  { %37 = dma.hbm_to_vmem [thread:$0]  %s1386_s3, 2048, %s1257_s20, [#allocation3], %s1192_s29, %s1192_s29, %s1193_s30  }
  0x24   :  { %s1194_s24 = smov [#allocation7]   ;;  %s1195_s26 = smov [#allocation8]  }
  0x25   :  { %s59_s25 = sshll.u32 %s1194_s24, 4  ;;  %s73_s27 = sshll.u32 %s1195_s26, 4  ;;  %s60_s25 = int_to_ptr.vmem [resolvable:$true] %s59_s25  ;;  %s1294_s27 = int_to_ptr.vmem [resolvable:$true] %s73_s27 }
  0x26   :  { %s1116_s13 = scalar_lea.hbm %s1390_s7, 2048 }
  0x27   :  { %p1117_p2 = scmp.ne.s32.totalorder %s1390_s7, %s1116_s13  ;;  %p1120_p3 = scmp.lt.u32.totalorder %s1116_s13, %s1390_s7 }
  0x29   :  { %p1122_p4 = pnand %p1120_p3, %p1117_p2 }
  0x2b   :  { %1125 = shalt.err (!%p1122_p4)
}
  0x2c   :  { %s1126_s3 = scalar_lea.vmem %s60_s25, 2048  ;;  %p1131_p6 = scmp.lt.s32.totalorder %s60_s25, %s60_s25 }
  0x2d   :  { %p1127_p5 = scmp.ne.s32.totalorder %s60_s25, %s1126_s3  ;;  %p1132_p7 = scmp.lt.s32.totalorder %s1126_s3, %s1126_s3 }
  0x2f   :  { %p1133_p8 = por %p1132_p7, %p1131_p6 }
  0x31   :  { %p1134_p9 = pnand %p1133_p8, %p1127_p5 }
  0x33   :  { %1137 = shalt.err (!%p1134_p9)
}
  0x34   :  { %65 = dma.hbm_to_vmem [thread:$0]  %s1390_s7, 2048, %s60_s25, [#allocation6], %s1192_s29, %s1192_s29, %s1193_s30  }
  0x35   :  { %s1138_s23 = scalar_lea.hbm %s1392_s9, 2048 }
  0x36   :  { %p1139_p10 = scmp.ne.s32.totalorder %s1392_s9, %s1138_s23  ;;  %p1142_p11 = scmp.lt.u32.totalorder %s1138_s23, %s1392_s9 }
  0x38   :  { %p1144_p12 = pnand %p1142_p11, %p1139_p10 }
  0x3a   :  { %1147 = shalt.err (!%p1144_p12)
}
  0x3b   :  { %s1148_s28 = scalar_lea.vmem %s1294_s27, 2048  ;;  %p1153_p0 = scmp.lt.s32.totalorder %s1294_s27, %s1294_s27 }
  0x3c   :  { %p1149_p13 = scmp.ne.s32.totalorder %s1294_s27, %s1148_s28  ;;  %p1154_p1 = scmp.lt.s32.totalorder %s1148_s28, %s1148_s28 }
  0x3e   :  { %p1155_p2 = por %p1154_p1, %p1153_p0 }
  0x40   :  { %p1156_p3 = pnand %p1155_p2, %p1149_p13 }
  0x42   :  { %1159 = shalt.err (!%p1156_p3)
}
  0x43   :  { %79 = dma.hbm_to_vmem [thread:$0]  %s1392_s9, 2048, %s1294_s27, [#allocation9], %s1192_s29, %s1192_s29, %s1193_s30  }
  0x44   :  { %1182 = dma.done.wait [#allocation3], 2048  }
  0x45   :  { %1183 = vsyncadd [#allocation3], 4294965248 }
  0x46   :  { %1184 = dma.done.wait [#allocation6], 4096  }
  0x47   :  { %1185 = vsyncadd [#allocation6], 4294963200 }
  0x48   :  { %1186 = dma.done.wait [#allocation9], 2048  }
  0x49   :  { %1187 = vsyncadd [#allocation9], 4294965248  ;;  %vm107_vm0 = vcmask 130048   ;;  %v98_v0 = vld [vmem:[%s1384_s1] sm:$0xff]  ;;  %v99_v1 = vld [vmem:[%s1384_s1 + $0x8] sm:$0xff] }
  0x4a   :  { %v94_v2 = vld [vmem:[%s1383_s0] sm:$0xff]  ;;  %v933_v3 = vpack.c.bf16 %v99_v1, %v98_v0  ;;  %v210_v5 = vld [vmem:[#allocation2 + $0x8] sm:$0xff]  ;;  %v211_v6 = vld [vmem:[#allocation2 + $0x10] sm:$0xff] }
  0x4b   :  { %775 = vmatprep.mubr.msk.f32.mxu0 %vm107_vm0, %v94_v2  ;;  %v209_v4 = vld [vmem:[#allocation2] sm:$0xff]  ;;  %v212_v8 = vld [vmem:[#allocation2 + $0x18] sm:$0xff]  ;;  %v95_v9 = vld [vmem:[%s1383_s0 + $0x8] sm:$0xff] }
  0x4c   :  { %934 = vmatprep.subr.bf16.mxu0 %v933_v3  ;;  %v937_v7 = vpack.c.bf16 %v210_v5, %v209_v4  ;;  %v941_v10 = vpack.c.bf16 %v212_v8, %v211_v6  ;;  %v213_v11 = vld [vmem:[#allocation2 + $0x20] sm:$0xff]  ;;  %v214_v12 = vld [vmem:[#allocation2 + $0x28] sm:$0xff]  ;;  %v96_v13 = vld [vmem:[%s1383_s0 + $0x10] sm:$0xff] }
  0x4d   :  { %936 = vmatpush3.bf16.msra.mxu0 %v933_v3  ;;  %v945_v14 = vpack.c.bf16 %v214_v12, %v213_v11  ;;  %v97_v15 = vld [vmem:[%s1383_s0 + $0x18] sm:$0xff]  ;;  %v215_v16 = vld [vmem:[#allocation2 + $0x30] sm:$0xff]  ;;  %v217_v19 = vld [vmem:[#allocation2 + $0x40] sm:$0xff] }
  0x4e   :  { %938 = vmatprep.subr.bf16.mxu1 %v937_v7  ;;  %v216_v17 = vld [vmem:[#allocation2 + $0x38] sm:$0xff]  ;;  %v218_v20 = vld [vmem:[#allocation2 + $0x48] sm:$0xff]  ;;  %v219_v22 = vld [vmem:[#allocation2 + $0x50] sm:$0xff] }
  0x4f   :  { %940 = vmatpush3.bf16.msra.mxu1 %v937_v7  ;;  %v949_v18 = vpack.c.bf16 %v216_v17, %v215_v16  ;;  %v953_v21 = vpack.c.bf16 %v218_v20, %v217_v19  ;;  %v220_v23 = vld [vmem:[#allocation2 + $0x58] sm:$0xff]  ;;  %v221_v25 = vld [vmem:[#allocation2 + $0x60] sm:$0xff]  ;;  %v222_v26 = vld [vmem:[#allocation2 + $0x68] sm:$0xff] }
  0x50   :  { %776 = vmatmul.mubr.msk.f32.vlgmr.msra.gmra.mrb[0].mxu0 %vm107_vm0, %v95_v9  ;;  %942 = vmatprep.subr.bf16.mxu1 %v941_v10  ;;  %v957_v24 = vpack.c.bf16 %v220_v23, %v219_v22  ;;  %v961_v27 = vpack.c.bf16 %v222_v26, %v221_v25  ;;  %v223_v28 = vld [vmem:[#allocation2 + $0x70] sm:$0xff]  ;;  %v224_v29 = vld [vmem:[#allocation2 + $0x78] sm:$0xff]  ;;  %v321_v31 = vld [vmem:[#allocation5] sm:$0xff] }
  0x51   :  { %778 = vmatprep.mubr.msk.f32.mxu0 %vm107_vm0, %v96_v13  ;;  %v965_v30 = vpack.c.bf16 %v224_v29, %v223_v28  ;;  %v322_v32 = vld [vmem:[#allocation5 + $0x8] sm:$0xff]  ;;  %v323_v33 = vld [vmem:[#allocation5 + $0x10] sm:$0xff]  ;;  %v324_v35 = vld [vmem:[#allocation5 + $0x18] sm:$0xff] }
  0x52   :  { %v969_v34 = vpack.c.bf16 %v322_v32, %v321_v31  ;;  %v973_v36 = vpack.c.bf16 %v324_v35, %v323_v33  ;;  %v325_v37 = vld [vmem:[#allocation5 + $0x20] sm:$0xff]  ;;  %v326_v38 = vld [vmem:[#allocation5 + $0x28] sm:$0xff]  ;;  %v327_v40 = vld [vmem:[#allocation5 + $0x30] sm:$0xff] }
  0x53   :  { %944 = vmatpush3.bf16.msra.mxu1 %v941_v10  ;;  %v977_v39 = vpack.c.bf16 %v326_v38, %v325_v37  ;;  %v328_v41 = vld [vmem:[#allocation5 + $0x38] sm:$0xff]  ;;  %v329_v43 = vld [vmem:[#allocation5 + $0x40] sm:$0xff]  ;;  %v330_v44 = vld [vmem:[#allocation5 + $0x48] sm:$0xff] }
  0x54   :  { %779 = vmatmul.mubr.msk.f32.gmra.mrb[2].mxu0 %vm107_vm0, %v97_v15  ;;  %946 = vmatprep.subr.bf16.mxu1 %v945_v14  ;;  %v981_v42 = vpack.c.bf16 %v328_v41, %v327_v40  ;;  %v985_v45 = vpack.c.bf16 %v330_v44, %v329_v43  ;;  %v331_v46 = vld [vmem:[#allocation5 + $0x50] sm:$0xff]  ;;  %v332_v47 = vld [vmem:[#allocation5 + $0x58] sm:$0xff]  ;;  %v333_v49 = vld [vmem:[#allocation5 + $0x60] sm:$0xff] }
  0x55   :  { %970 = vmatprep.subr.bf16.mxu0 %v969_v34  ;;  %v989_v48 = vpack.c.bf16 %v332_v47, %v331_v46  ;;  %v334_v50 = vld [vmem:[#allocation5 + $0x68] sm:$0xff]  ;;  %v676_v52 = vld [vmem:[%s1385_s2] ss:$0 sm:$0xff]  ;;  %v335_v1 = vld [vmem:[#allocation5 + $0x70] sm:$0xff] }
  0x56   :  { %972 = vmatpush3.bf16.msra.mxu0 %v969_v34  ;;  %v993_v51 = vpack.c.bf16 %v334_v50, %v333_v49  ;;  %v336_v2 = vld [vmem:[#allocation5 + $0x78] sm:$0xff]  ;;  %v433_v4 = vld [vmem:[#allocation7] sm:$0xff]  ;;  %v434_v5 = vld [vmem:[#allocation7 + $0x8] sm:$0xff] }
  0x57   :  { %948 = vmatpush3.bf16.msra.mxu1 %v945_v14  ;;  %974 = vmatprep.subr.bf16.mxu0 %v973_v36  ;;  %v997_v3 = vpack.c.bf16 %v336_v2, %v335_v1  ;;  %v435_v6 = vld [vmem:[#allocation7 + $0x10] sm:$0xff]  ;;  %v1001_v7 = vpack.c.bf16 %v434_v5, %v433_v4  ;;  %v436_v8 = vld [vmem:[#allocation7 + $0x18] sm:$0xff]  ;;  %v437_v10 = vld [vmem:[#allocation7 + $0x20] sm:$0xff] }
  0x58   :  { %950 = vmatprep.subr.bf16.mxu1 %v949_v18  ;;  %v1005_v9 = vpack.c.bf16 %v436_v8, %v435_v6  ;;  %v438_v11 = vld [vmem:[#allocation7 + $0x28] sm:$0xff]  ;;  %v439_v13 = vld [vmem:[#allocation7 + $0x30] sm:$0xff]  ;;  %v440_v14 = vld [vmem:[#allocation7 + $0x38] sm:$0xff] }
  0x59   :  { %v1009_v12 = vpack.c.bf16 %v438_v11, %v437_v10  ;;  %v1013_v15 = vpack.c.bf16 %v440_v14, %v439_v13  ;;  %v441_v16 = vld [vmem:[#allocation7 + $0x40] sm:$0xff]  ;;  %v442_v17 = vld [vmem:[#allocation7 + $0x48] sm:$0xff]  ;;  %v443_v19 = vld [vmem:[#allocation7 + $0x50] sm:$0xff] }
  0x5a   :  { %976 = vmatpush3.bf16.msra.mxu0 %v973_v36  ;;  %v444_v20 = vld [vmem:[#allocation7 + $0x58] sm:$0xff]  ;;  %v445_v22 = vld [vmem:[#allocation7 + $0x60] sm:$0xff]  ;;  %v446_v23 = vld [vmem:[#allocation7 + $0x68] sm:$0xff] }
  0x5b   :  { %952 = vmatpush3.bf16.msra.mxu1 %v949_v18  ;;  %978 = vmatprep.subr.bf16.mxu0 %v977_v39  ;;  %v1017_v18 = vpack.c.bf16 %v442_v17, %v441_v16  ;;  %v681_v25 = vld [vmem:[%s1387_s4] ss:$0 sm:$0xff]  ;;  %v447_v38 = vld [vmem:[#allocation7 + $0x70] sm:$0xff] }
  0x5c   :  { %954 = vmatprep.subr.bf16.mxu1 %v953_v21  ;;  %v545_v41 = vld [vmem:[#allocation8] sm:$0xff]  ;;  %v547_v43 = vld [vmem:[#allocation8 + $0x10] sm:$0xff] }
  0x5d   :  { %v549_v47 = vld [vmem:[#allocation8 + $0x20] sm:$0xff]  ;;  %v551_v50 = vld [vmem:[#allocation8 + $0x30] sm:$0xff] }
  0x5e   :  { %980 = vmatpush3.bf16.msra.mxu0 %v977_v39  ;;  %v448_v39 = vld [vmem:[#allocation7 + $0x78] sm:$0xff]  ;;  %v559_v11 = vld [vmem:[#allocation8 + $0x70] sm:$0xff]  ;;  %v683_v14 = vld [vmem:[%s1391_s8] ss:$0 sm:$0xff]  ;;  %s1196_s8 = smov [#allocation10]  }
  0x5f   :  { %956 = vmatpush3.bf16.msra.mxu1 %v953_v21  ;;  %982 = vmatprep.subr.bf16.mxu0 %v981_v42  ;;  %v1021_v21 = vpack.c.bf16 %v444_v20, %v443_v19  ;;  %v1029_v40 = vpack.c.bf16 %v448_v39, %v447_v38  ;;  %s662_s26 = sshll.u32 %s1196_s8, 4  ;;  %s663_s26 = int_to_ptr.vmem [resolvable:$true] %s662_s26 }
  0x60   :  { %958 = vmatprep.subr.bf16.mxu1 %v957_v24  ;;  %s1160_s28 = scalar_lea.vmem %s663_s26, 512  ;;  %p1165_p5 = scmp.lt.s32.totalorder %s663_s26, %s663_s26 }
  0x61   :  { %p1161_p4 = scmp.ne.s32.totalorder %s663_s26, %s1160_s28  ;;  %p1166_p6 = scmp.lt.s32.totalorder %s1160_s28, %s1160_s28 }
  0x62   :  { %984 = vmatpush3.bf16.msra.mxu0 %v981_v42  ;;  %v546_v42 = vld [vmem:[#allocation8 + $0x8] sm:$0xff] }
  0x63   :  { %960 = vmatpush3.bf16.msra.mxu1 %v957_v24  ;;  %986 = vmatprep.subr.bf16.mxu0 %v985_v45  ;;  %v1025_v24 = vpack.c.bf16 %v446_v23, %v445_v22  ;;  %v1033_v44 = vpack.c.bf16 %v546_v42, %v545_v41  ;;  %p1167_p7 = por %p1166_p6, %p1165_p5 }
  0x64   :  { %962 = vmatprep.subr.bf16.mxu1 %v961_v27 }
  0x65   :  { %p1168_p8 = pnand %p1167_p7, %p1161_p4 }
  0x66   :  { %988 = vmatpush3.bf16.msra.mxu0 %v985_v45  ;;  %v548_v45 = vld [vmem:[#allocation8 + $0x18] sm:$0xff] }
  0x67   :  { %964 = vmatpush3.bf16.msra.mxu1 %v961_v27  ;;  %990 = vmatprep.subr.bf16.mxu0 %v989_v48  ;;  %v1037_v46 = vpack.c.bf16 %v548_v45, %v547_v43 }
  0x68   :  { %966 = vmatprep.subr.bf16.mxu1 %v965_v30 }
  0x6a   :  { %992 = vmatpush3.bf16.msra.mxu0 %v989_v48  ;;  %v550_v48 = vld [vmem:[#allocation8 + $0x28] sm:$0xff] }
  0x6b   :  { %968 = vmatpush3.bf16.msra.mxu1 %v965_v30  ;;  %994 = vmatprep.subr.bf16.mxu0 %v993_v51  ;;  %v1041_v49 = vpack.c.bf16 %v550_v48, %v549_v47 }
  0x6c   :  { %1002 = vmatprep.subr.bf16.mxu1 %v1001_v7 }
  0x6e   :  { %996 = vmatpush3.bf16.msra.mxu0 %v993_v51  ;;  %v552_v51 = vld [vmem:[#allocation8 + $0x38] sm:$0xff] }
  0x6f   :  { %998 = vmatprep.subr.bf16.mxu0 %v997_v3 }
  0x72   :  { %1000 = vmatpush3.bf16.msra.mxu0 %v997_v3 }
  0x73   :  { %1034 = vmatprep.subr.bf16.mxu0 %v1033_v44 }
 0x123   :  { %v777_v53 = vpop.f32.mrb[0].mxu0 }
 0x124   :  { %v192_v54 = vadd.f32 %v777_v53, %v676_v52  ;;  %v186_v55 = vpop.f32.mrb[1].mxu0  ;;  %v553_v53 = vld [vmem:[#allocation8 + $0x40] sm:$0xff] }
 0x125   :  { %v187_v56 = vadd.f32 %v676_v52, %v186_v55 }
 0x126   :  { %v206_v59 = vmax.f32 %v192_v54, 0.0  ;;  %v554_v54 = vld [vmem:[#allocation8 + $0x48] sm:$0xff] }
 0x127   :  { %v780_v57 = vpop.f32.mrb[2].mxu0  ;;  %v205_v58 = vmax.f32 %v187_v56, 0.0  ;;  %v1049_v55 = vpack.c.bf16 %v554_v54, %v553_v53  ;;  %v555_v56 = vld [vmem:[#allocation8 + $0x50] sm:$0xff] }
 0x128   :  { %v202_v60 = vadd.f32 %v780_v57, %v676_v52  ;;  %v196_v61 = vpop.f32.mrb[3].mxu0  ;;  %v556_v57 = vld [vmem:[#allocation8 + $0x58] sm:$0xff] }
 0x129   :  { %v197_v62 = vadd.f32 %v676_v52, %v196_v61  ;;  %813 = vmatprep.mubr.f32.mxu1 %v205_v58  ;;  %v1045_v52 = vpack.c.bf16 %v552_v51, %v551_v50  ;;  %v1053_v58 = vpack.c.bf16 %v556_v57, %v555_v56 }
 0x12a   :  { %814 = vmatmul.mubr.f32.vlgmr.msra.gmra.mrb[0].mxu1 %v206_v59  ;;  %v208_v0 = vmax.f32 %v202_v60, 0.0  ;;  %v557_v59 = vld [vmem:[#allocation8 + $0x60] sm:$0xff]  ;;  %v558_v60 = vld [vmem:[#allocation8 + $0x68] sm:$0xff] }
 0x12b   :  { %v207_v63 = vmax.f32 %v197_v62, 0.0  ;;  %1004 = vmatpush3.bf16.msra.mxu1 %v1001_v7  ;;  %v1057_v61 = vpack.c.bf16 %v558_v60, %v557_v59  ;;  %v682_v62 = vld [vmem:[%s1389_s6] ss:$0 sm:$0xff] }
 0x12c   :  { %1006 = vmatprep.subr.bf16.mxu1 %v1005_v9 }
 0x12d   :  { %816 = vmatprep.mubr.f32.mxu1 %v207_v63 }
 0x12e   :  { %817 = vmatmul.mubr.f32.gmra.mrb[2].mxu1 %v208_v0 }
 0x12f   :  { %1008 = vmatpush3.bf16.msra.mxu1 %v1005_v9 }
 0x130   :  { %1010 = vmatprep.subr.bf16.mxu1 %v1009_v12 }
 0x133   :  { %1012 = vmatpush3.bf16.msra.mxu1 %v1009_v12  ;;  %v560_v12 = vld [vmem:[#allocation8 + $0x78] sm:$0xff] }
 0x134   :  { %1014 = vmatprep.subr.bf16.mxu1 %v1013_v15  ;;  %v1061_v13 = vpack.c.bf16 %v560_v12, %v559_v11 }
 0x137   :  { %1016 = vmatpush3.bf16.msra.mxu1 %v1013_v15 }
 0x138   :  { %1018 = vmatprep.subr.bf16.mxu1 %v1017_v18 }
 0x13b   :  { %1020 = vmatpush3.bf16.msra.mxu1 %v1017_v18 }
 0x13c   :  { %1022 = vmatprep.subr.bf16.mxu1 %v1021_v21 }
 0x13f   :  { %1024 = vmatpush3.bf16.msra.mxu1 %v1021_v21 }
 0x140   :  { %1026 = vmatprep.subr.bf16.mxu1 %v1025_v24 }
 0x143   :  { %1028 = vmatpush3.bf16.msra.mxu1 %v1025_v24 }
 0x144   :  { %1030 = vmatprep.subr.bf16.mxu1 %v1029_v40 }
 0x147   :  { %1032 = vmatpush3.bf16.msra.mxu1 %v1029_v40 }
 0x1fd   :  { %v815_v26 = vpop.f32.mrb[0].mxu1 }
 0x1fe   :  { %v304_v27 = vadd.f32 %v815_v26, %v681_v25  ;;  %v298_v28 = vpop.f32.mrb[1].mxu1 }
 0x1ff   :  { %v299_v29 = vadd.f32 %v681_v25, %v298_v28 }
 0x200   :  { %v318_v32 = vmax.f32 %v304_v27, 0.0  ;;  %v684_v27 = vld [vmem:[%s1393_s10] ss:$0 sm:$0xff] }
 0x201   :  { %v317_v30 = vmax.f32 %v299_v29, 0.0  ;;  %v818_v31 = vpop.f32.mrb[2].mxu1 }
 0x202   :  { %v314_v33 = vadd.f32 %v818_v31, %v681_v25  ;;  %v308_v34 = vpop.f32.mrb[3].mxu1 }
 0x203   :  { %v309_v35 = vadd.f32 %v681_v25, %v308_v34  ;;  %851 = vmatprep.mubr.f32.mxu0 %v317_v30 }
 0x204   :  { %852 = vmatmul.mubr.f32.vlgmr.msra.gmra.mrb[4].mxu0 %v318_v32  ;;  %v320_v37 = vmax.f32 %v314_v33, 0.0 }
 0x205   :  { %v319_v36 = vmax.f32 %v309_v35, 0.0  ;;  %1036 = vmatpush3.bf16.msra.mxu0 %v1033_v44 }
 0x206   :  { %1038 = vmatprep.subr.bf16.mxu0 %v1037_v46 }
 0x207   :  { %854 = vmatprep.mubr.f32.mxu0 %v319_v36 }
 0x208   :  { %855 = vmatmul.mubr.f32.gmra.mrb[6].mxu0 %v320_v37 }
 0x209   :  { %1040 = vmatpush3.bf16.msra.mxu0 %v1037_v46 }
 0x20a   :  { %1042 = vmatprep.subr.bf16.mxu0 %v1041_v49 }
 0x20d   :  { %1044 = vmatpush3.bf16.msra.mxu0 %v1041_v49 }
 0x20e   :  { %1046 = vmatprep.subr.bf16.mxu0 %v1045_v52 }
 0x211   :  { %1048 = vmatpush3.bf16.msra.mxu0 %v1045_v52 }
 0x212   :  { %1050 = vmatprep.subr.bf16.mxu0 %v1049_v55 }
 0x215   :  { %1052 = vmatpush3.bf16.msra.mxu0 %v1049_v55 }
 0x216   :  { %1054 = vmatprep.subr.bf16.mxu0 %v1053_v58 }
 0x219   :  { %1056 = vmatpush3.bf16.msra.mxu0 %v1053_v58 }
 0x21a   :  { %1058 = vmatprep.subr.bf16.mxu0 %v1057_v61 }
 0x21d   :  { %1060 = vmatpush3.bf16.msra.mxu0 %v1057_v61 }
 0x21e   :  { %1062 = vmatprep.subr.bf16.mxu0 %v1061_v13 }
 0x221   :  { %1064 = vmatpush3.bf16.msra.mxu0 %v1061_v13 }
 0x2d7   :  { %v853_v63 = vpop.f32.mrb[4].mxu0 }
 0x2d8   :  { %v416_v0 = vadd.f32 %v853_v63, %v682_v62  ;;  %v410_v1 = vpop.f32.mrb[5].mxu0 }
 0x2d9   :  { %v411_v2 = vadd.f32 %v682_v62, %v410_v1 }
 0x2da   :  { %v430_v5 = vmax.f32 %v416_v0, 0.0 }
 0x2db   :  { %v429_v3 = vmax.f32 %v411_v2, 0.0  ;;  %v856_v4 = vpop.f32.mrb[6].mxu0 }
 0x2dc   :  { %v426_v6 = vadd.f32 %v856_v4, %v682_v62  ;;  %v420_v7 = vpop.f32.mrb[7].mxu0 }
 0x2dd   :  { %v421_v8 = vadd.f32 %v682_v62, %v420_v7  ;;  %889 = vmatprep.mubr.f32.mxu1 %v429_v3 }
 0x2de   :  { %890 = vmatmul.mubr.f32.vlgmr.msra.gmra.mrb[4].mxu1 %v430_v5  ;;  %v432_v10 = vmax.f32 %v426_v6, 0.0 }
 0x2df   :  { %v431_v9 = vmax.f32 %v421_v8, 0.0 }
 0x2e1   :  { %892 = vmatprep.mubr.f32.mxu1 %v431_v9 }
 0x2e2   :  { %893 = vmatmul.mubr.f32.gmra.mrb[6].mxu1 %v432_v10 }
 0x3b1   :  { %v891_v15 = vpop.f32.mrb[4].mxu1 }
 0x3b2   :  { %v528_v16 = vadd.f32 %v891_v15, %v683_v14  ;;  %v522_v17 = vpop.f32.mrb[5].mxu1 }
 0x3b3   :  { %v523_v18 = vadd.f32 %v683_v14, %v522_v17 }
 0x3b4   :  { %v542_v21 = vmax.f32 %v528_v16, 0.0 }
 0x3b5   :  { %v541_v19 = vmax.f32 %v523_v18, 0.0  ;;  %v894_v20 = vpop.f32.mrb[6].mxu1 }
 0x3b6   :  { %v538_v22 = vadd.f32 %v894_v20, %v683_v14  ;;  %v532_v23 = vpop.f32.mrb[7].mxu1 }
 0x3b7   :  { %v533_v24 = vadd.f32 %v683_v14, %v532_v23  ;;  %927 = vmatprep.mubr.f32.mxu0 %v541_v19 }
 0x3b8   :  { %928 = vmatmul.mubr.f32.vlgmr.msra.gmra.mrb[8].mxu0 %v542_v21  ;;  %v544_v26 = vmax.f32 %v538_v22, 0.0 }
 0x3b9   :  { %v543_v25 = vmax.f32 %v533_v24, 0.0 }
 0x3bb   :  { %930 = vmatprep.mubr.f32.mxu0 %v543_v25 }
 0x3bc   :  { %931 = vmatmul.mubr.f32.gmra.mrb[10].mxu0 %v544_v26 }
 0x48b   :  { %v929_v28 = vpop.f32.mrb[8].mxu0 }
 0x48c   :  { %v640_v29 = vadd.f32 %v929_v28, %v684_v27  ;;  %v634_v30 = vpop.f32.mrb[9].mxu0 }
 0x48d   :  { %v635_v31 = vadd.f32 %v684_v27, %v634_v30 }
 0x48e   :  { %654 = vst [vmem:[#allocation10 + $0x8] sm:$0xff] %v640_v29 }
 0x48f   :  { %653 = vst [vmem:[#allocation10] sm:$0xff] %v635_v31  ;;  %v932_v32 = vpop.f32.mrb[10].mxu0 }
 0x490   :  { %v650_v33 = vadd.f32 %v932_v32, %v684_v27  ;;  %v644_v34 = vpop.f32.mrb[11].mxu0 }
 0x491   :  { %v645_v35 = vadd.f32 %v684_v27, %v644_v34 }
 0x492   :  { %656 = vst [vmem:[#allocation10 + $0x18] sm:$0xff] %v650_v33 }
 0x493   :  { %655 = vst [vmem:[#allocation10 + $0x10] sm:$0xff] %v645_v35 }
 0x494   :  { %1171 = shalt.err (!%p1168_p8)
}
 0x495   :  { %s1172_s25 = scalar_lea.hbm %s1394_s11, 512 }
 0x496   :  { %p1173_p9 = scmp.ne.s32.totalorder %s1394_s11, %s1172_s25  ;;  %p1176_p10 = scmp.lt.u32.totalorder %s1172_s25, %s1394_s11 }
 0x498   :  { %p1178_p11 = pnand %p1176_p10, %p1173_p9 }
 0x49a   :  { %1181 = shalt.err (!%p1178_p11)
}
 0x49b   :  { %668 = dma.vmem_to_hbm [thread:$0]  %s663_s26, 512, %s1394_s11, [#allocation4], %s1192_s29, %s1192_s29, %s1193_s30  }
 0x49c   :  { %1188 = dma.done.wait [#allocation4], 512  }
 0x49d   :  { %1189 = vsyncadd [#allocation4], 4294966784 }
 0x49e   :  { %672 = vsyncpa [#allocation3], 1 }
 0x49f   :  { %673 = vsyncpa [#allocation6], 1 }
 0x4a0   :  { %674 = vsyncpa [#allocation9], 1 }
 0x4a1   :  { %675 = vsyncpa [#allocation4], 1 }

</bundles_post_ra>
